<compile_context>
chip_gen: v5e
topology: v5e:2x2
jax: 0.10.0
libtpu: 0.0.40
codegen_flags: <defaults>
</compile_context>

<pallas_src>
import functools

import jax
import jax.numpy as jnp
from jax.experimental import pallas as pl
from jax.experimental.pallas import tpu as pltpu

LANE = 128
_SUBLANE_ALIGN = 32          # 1-byte mask needs 32-row sublane tiles when tiled
_VMEM_STEP_BUDGET = 36 << 20  # double-buffered per-step input footprint cap


def _masked_mse_partial_kernel(o_ref, t_ref, m_ref, out_ref, *,
                               block_rows, total_rows, need_row_mask):
    # Cast narrow dtypes (bf16/f16/...) to f32 on the VPU — free vs. the DMA.
    o = o_ref[...].astype(jnp.float32)
    t = t_ref[...].astype(jnp.float32)
    d = o - t
    d2 = d * d

    m = m_ref[...]
    sel = m if m.dtype == jnp.bool_ else (m != 0)
    if need_row_mask:
        # The last grid block hangs off the end of the array: rows >=
        # total_rows contain unspecified data, so force them out of the
        # selection (jnp.where below then ignores any garbage values).
        row = pl.program_id(0) * block_rows + jax.lax.broadcasted_iota(
            jnp.int32, d2.shape, 0)
        sel = jnp.logical_and(sel, row < total_rows)

    # Per-lane partials only (sublane reduce); the tiny cross-lane/cross-block
    # finish and the divide happen in the wrapper.
    psum = jnp.sum(jnp.where(sel, d2, 0.0), axis=0, keepdims=True)    # (1,128)
    pcnt = jnp.sum(sel.astype(jnp.float32), axis=0, keepdims=True)    # (1,128)
    out_ref[...] = jnp.concatenate([psum, pcnt], axis=0)[None]        # (1,2,128)


def _grid_dimension_semantics():
    # v7x has two TensorCores per chip; splitting the (fully independent)
    # block loop across both lets each core stream half the array.  Detect
    # v7x via its 64 MiB-per-TC VMEM; v5e/v6e report 128 MiB and are 1-TC.
    try:
        if pltpu.get_tpu_info().vmem_capacity_bytes <= (64 << 20):
            return (pltpu.CORE_PARALLEL,)
    except Exception:
        pass
    return ("parallel",)


def masked_mse_loss(output, target, mask, *, block_rows=8192):
    """mean((output[mask] - target[mask])**2), matching the torch module."""
    assert block_rows % _SUBLANE_ALIGN == 0, "block_rows must be a multiple of 32"

    o = output.reshape(-1)                 # native dtype: no f32 upcast copy
    t = target.reshape(-1)
    m = mask.reshape(-1)
    if m.dtype != jnp.bool_ and jnp.dtype(m.dtype).itemsize != 1:
        # Only genuinely wide masks get narrowed; bool / byte masks stream
        # into the kernel as-is (no extra HBM pass).
        m = (m != 0)

    n = o.shape[0]
    pad = (-n) % LANE
    if pad:
        # TODO(synk): a flat 1-D streaming variant with an in-kernel element
        # predicate would remove this extra read+write pass; it only triggers
        # when the flat size is not a multiple of 128 (<=127 pad elements,
        # padded mask = 0 so the pad contributes nothing).
        o = jnp.pad(o, (0, pad))
        t = jnp.pad(t, (0, pad))
        m = jnp.pad(m, (0, pad))

    rows = o.shape[0] // LANE
    o = o.reshape(rows, LANE)
    t = t.reshape(rows, LANE)
    m = m.reshape(rows, LANE)

    # Largest block that fits comfortably in scoped VMEM (double-buffered).
    bytes_per_row = LANE * (o.dtype.itemsize + t.dtype.itemsize + m.dtype.itemsize)
    br = block_rows
    while br > _SUBLANE_ALIGN and 2 * br * bytes_per_row > _VMEM_STEP_BUDGET:
        br //= 2
    br = max(br - br % _SUBLANE_ALIGN, _SUBLANE_ALIGN)
    if rows <= br:
        br = rows                          # single-step fast path, whole array
    num_blocks = pl.cdiv(rows, br)
    need_row_mask = (rows % br) != 0       # only the ragged last block

    vmem_limit = int(min(max(2 * br * bytes_per_row + (4 << 20), 32 << 20), 48 << 20))

    kernel = functools.partial(
        _masked_mse_partial_kernel,
        block_rows=br, total_rows=rows, need_row_mask=need_row_mask)

    in_spec = pl.BlockSpec((br, LANE), lambda i: (i, 0))
    out_spec = pl.BlockSpec((1, 2, LANE), lambda i: (i, 0, 0))

    parts = pl.pallas_call(
        kernel,
        out_shape=jax.ShapeDtypeStruct((num_blocks, 2, LANE), jnp.float32),
        grid_spec=pltpu.PrefetchScalarGridSpec(
            num_scalar_prefetch=0,
            grid=(num_blocks,),
            in_specs=[in_spec, in_spec, in_spec],
            out_specs=out_spec,
        ),
        compiler_params=pltpu.CompilerParams(
            dimension_semantics=_grid_dimension_semantics(),
            vmem_limit_bytes=vmem_limit),
    )(o, t, m)

    # Tiny epilogue: finish the reduction and divide.  Counts are exact small
    # integers per block/lane, so finish them in int32 for exactness at large
    # sizes.  0/0 -> NaN intentionally matches torch .mean() over an empty
    # selection.
    total_sum = jnp.sum(parts[:, 0, :])
    total_cnt = jnp.sum(parts[:, 1, :].astype(jnp.int32)).astype(jnp.float32)
    return total_sum / total_cnt


class MaskedMSELoss:
    """Parity shim for the torch nn.Module."""

    def __call__(self, output, target, mask):
        return masked_mse_loss(output, target, mask)


def _ref(output, target, mask):
    mf = mask.astype(jnp.float32)
    d = output.astype(jnp.float32) - target.astype(jnp.float32)
    return jnp.sum(jnp.square(d) * mf) / jnp.sum(mf)


if __name__ == "__main__":
    key = jax.random.PRNGKey(0)

    # 1) Nominal NCHW-style case: single-block fast path.
    k1, k2, k3, key = jax.random.split(key, 4)
    shape = (2, 4, 16, 16)
    output = jax.random.normal(k1, shape, dtype=jnp.float32)
    target = jax.random.normal(k2, shape, dtype=jnp.float32)
    mask = jax.random.bernoulli(k3, p=0.5, shape=shape)
    loss = jax.block_until_ready(masked_mse_loss(output, target, mask))
    assert jnp.allclose(loss, _ref(output, target, mask), rtol=1e-5, atol=1e-6), loss

    # 2) Multi-block tiled path with a ragged last block (parallel partials +
    #    in-kernel row predicate), forced small via block_rows=32.
    k1, k2, k3, key = jax.random.split(key, 4)
    shape = (2, 4, 37, 16)                 # 4736 elems -> 37 rows of 128
    output = jax.random.normal(k1, shape, dtype=jnp.float32)
    target = jax.random.normal(k2, shape, dtype=jnp.float32)
    mask = jax.random.bernoulli(k3, p=0.5, shape=shape)
    loss = jax.block_until_ready(
        masked_mse_loss(output, target, mask, block_rows=32))
    assert jnp.allclose(loss, _ref(output, target, mask), rtol=1e-5, atol=1e-6), loss

    # 3) Non-lane-aligned flat size (exercises the <=127-element pad path).
    k1, k2, k3, key = jax.random.split(key, 4)
    shape = (3, 5, 7, 11)                  # 1155 elems
    output = jax.random.normal(k1, shape, dtype=jnp.float32)
    target = jax.random.normal(k2, shape, dtype=jnp.float32)
    mask = jax.random.bernoulli(k3, p=0.5, shape=shape)
    loss = jax.block_until_ready(masked_mse_loss(output, target, mask))
    assert jnp.allclose(loss, _ref(output, target, mask), rtol=1e-5, atol=1e-6), loss

    # 4) bf16 inputs stream in native dtype and are upcast on the VPU.
    k1, k2, k3, key = jax.random.split(key, 4)
    shape = (2, 4, 16, 16)
    output = jax.random.normal(k1, shape, dtype=jnp.bfloat16)
    target = jax.random.normal(k2, shape, dtype=jnp.bfloat16)
    mask = jax.random.bernoulli(k3, p=0.5, shape=shape)
    loss = jax.block_until_ready(masked_mse_loss(output, target, mask))
    assert jnp.allclose(loss, _ref(output, target, mask), rtol=2e-2, atol=1e-3), loss

    print("KERNEL_OK")
</pallas_src>

<mosaic_0001>
module attributes {stable_mosaic.version = 11 : i64} {
  func.func @_masked_mse_partial_kernel(%arg0: i32, %arg1: memref<16x128xf32, #tpu.memory_space<vmem>>, %arg2: memref<16x128xf32, #tpu.memory_space<vmem>>, %arg3: memref<16x128xi32, #tpu.memory_space<vmem>>, %arg4: memref<1x2x128xf32, #tpu.memory_space<vmem>>) attributes {dimension_semantics = [#tpu.dimension_semantics<parallel>], iteration_bounds = array<i64: 1>, scalar_prefetch = 0 : i64, scratch_operands = 0 : i64, tpu.core_type = #tpu.core_type<tc>, window_params = [{transform_indices = @transform_0, window_bounds = array<i64: 16, 128>}, {transform_indices = @transform_1, window_bounds = array<i64: 16, 128>}, {transform_indices = @transform_2, window_bounds = array<i64: 16, 128>}, {transform_indices = @transform_3, window_bounds = array<i64: 1, 2, 128>}]} {
    %c0 = arith.constant 0 : index
    %c0_0 = arith.constant 0 : index
    %0 = vector.load %arg1[%c0, %c0_0] : memref<16x128xf32, #tpu.memory_space<vmem>>, vector<16x128xf32>
    %c0_1 = arith.constant 0 : index
    %c0_2 = arith.constant 0 : index
    %1 = vector.load %arg2[%c0_1, %c0_2] : memref<16x128xf32, #tpu.memory_space<vmem>>, vector<16x128xf32>
    %2 = arith.subf %0, %1 : vector<16x128xf32>
    %3 = arith.mulf %2, %2 : vector<16x128xf32>
    %c0_3 = arith.constant 0 : index
    %c0_4 = arith.constant 0 : index
    %4 = vector.load %arg3[%c0_3, %c0_4] : memref<16x128xi32, #tpu.memory_space<vmem>>, vector<16x128xi32>
    %cst = arith.constant dense<0> : vector<16x128xi32>
    %5 = arith.cmpi ne, %4, %cst : vector<16x128xi32>
    %cst_5 = arith.constant 0.000000e+00 : f32
    %6 = vector.broadcast %cst_5 : f32 to vector<16x128xf32>
    %7 = arith.select %5, %3, %6 : vector<16x128xi1>, vector<16x128xf32>
    %cst_6 = arith.constant dense<0.000000e+00> : vector<128xf32>
    %8 = vector.multi_reduction <add>, %7, %cst_6 [0] : vector<16x128xf32> to vector<128xf32>
    %9 = vector.shape_cast %8 : vector<128xf32> to vector<1x128xf32>
    %10 = arith.extui %5 : vector<16x128xi1> to vector<16x128xi32>
    %11 = arith.sitofp %10 : vector<16x128xi32> to vector<16x128xf32>
    %cst_7 = arith.constant dense<0.000000e+00> : vector<128xf32>
    %12 = vector.multi_reduction <add>, %11, %cst_7 [0] : vector<16x128xf32> to vector<128xf32>
    %13 = vector.shape_cast %12 : vector<128xf32> to vector<1x128xf32>
    %14 = tpu.concatenate %9, %13 in 0 : vector<1x128xf32>, vector<1x128xf32> -> vector<2x128xf32>
    %15 = vector.shape_cast %14 : vector<2x128xf32> to vector<1x2x128xf32>
    %c0_8 = arith.constant 0 : index
    %c0_9 = arith.constant 0 : index
    %c0_10 = arith.constant 0 : index
    %16 = vector.load %arg4[%c0_8, %c0_9, %c0_10] : memref<1x2x128xf32, #tpu.memory_space<vmem>>, vector<1x2x128xf32>
    tpu.vector_store %arg4[%c0_8, %c0_9, %c0_10], %15 {strides = array<i32>} : memref<1x2x128xf32, #tpu.memory_space<vmem>>, vector<1x2x128xf32>,
    return
  }
  func.func @transform_0(%arg0: i32) -> (i32, i32) {
    %c0_i32 = arith.constant 0 : i32
    %c0_i32_0 = arith.constant 0 : i32
    return %arg0, %c0_i32 : i32, i32
  }
  func.func @transform_1(%arg0: i32) -> (i32, i32) {
    %c0_i32 = arith.constant 0 : i32
    %c0_i32_0 = arith.constant 0 : i32
    return %arg0, %c0_i32 : i32, i32
  }
  func.func @transform_2(%arg0: i32) -> (i32, i32) {
    %c0_i32 = arith.constant 0 : i32
    %c0_i32_0 = arith.constant 0 : i32
    return %arg0, %c0_i32 : i32, i32
  }
  func.func @transform_3(%arg0: i32) -> (i32, i32, i32) {
    %c0_i32 = arith.constant 0 : i32
    %c0_i32_0 = arith.constant 0 : i32
    %c0_i32_1 = arith.constant 0 : i32
    return %arg0, %c0_i32, %c0_i32_0 : i32, i32, i32
  }
}

</mosaic_0001>

<bundles_post_ra>
// kernel: tpu_custom_call.1
= control target key start
LH: loop header
LB: loop body
LE: loop exit
PB: predicated region body
PF: predicated region fallthrough
CT: control target
= control target key end

     0   :  { %8 = vsyncpa [#allocation3], 0  ;;  %s185_s0 = inlined_call_operand.vmem [shape: f32[16,128], index: 0, kind: input, shape index: {}]   ;;  %s186_s1 = inlined_call_operand.hbm [shape: f32[16,128], index: 1, kind: input, shape index: {}]   ;;  %s187_s2 = inlined_call_operand.vmem [shape: s32[16,128], index: 2, kind: input, shape index: {}]   ;;  %s188_s3 = inlined_call_operand.hbm [shape: f32[1,2,128], index: 3, kind: output, shape index: {}]  }
   0x1   :  { %9 = vsyncpa [#allocation4], 0  ;;  %s16_s14 = sshll.u32 %s186_s1, 4  ;;  %s142_s15 = smov [#allocation2]   ;;  %s17_s14 = int_to_ptr.hbm [resolvable:$true] %s16_s14 }
   0x2   :  { %s18_s16 = sshll.u32 %s142_s15, 4  ;;  %s143_s17 = smov 128   ;;  %s19_s16 = int_to_ptr.vmem [resolvable:$true] %s18_s16 }
   0x3   :  { %s144_s18 = smov 8  }
   0x4   :  { %24 = dma.hbm_to_vmem [thread:$0]  %s17_s14, 256, %s19_s16, [#allocation3], %s143_s17, %s143_s17, %s144_s18  }
   0x5   :  { %138 = dma.done.wait [#allocation3], 256  }
   0x6   :  { %139 = vsyncadd [#allocation3], 4294967040  ;;  %v31_v0 = vld [vmem:[%s185_s0] sm:$0xff]  ;;  %v32_v1 = vld [vmem:[%s185_s0 + $0x8] sm:$0xff]  ;;  %v145_v9 = vmov 0.0   ;;  %s146_s0 = smov [#allocation5]  }
   0x7   :  { %v33_v2 = vld [vmem:[#allocation2] sm:$0xff]  ;;  %v34_v3 = vld [vmem:[#allocation2 + $0x8] sm:$0xff]  ;;  %s73_s28 = sshll.u32 %s188_s3, 4  ;;  %vm63_vm2 = vcmask 1040384   ;;  %s74_s28 = int_to_ptr.hbm [resolvable:$true] %s73_s28 }
   0x8   :  { %v35_v4 = vsub.f32 %v31_v0, %v33_v2  ;;  %v39_v5 = vld [vmem:[%s187_s2] sm:$0xff]  ;;  %v40_v6 = vld [vmem:[%s187_s2 + $0x8] sm:$0xff]  ;;  %v36_v7 = vsub.f32 %v32_v1, %v34_v3  ;;  %s71_s2 = sshll.u32 %s146_s0, 4  ;;  %s72_s2 = int_to_ptr.vmem [resolvable:$true] %s71_s2 }
   0x9   :  { %vm41_vm0 = vcmp.ne.s32.totalorder %v39_v5, 0  ;;  %vm42_vm1 = vcmp.ne.s32.totalorder %v40_v6, 0 }
   0xa   :  { %v37_v8 = vmul.f32 %v35_v4, %v35_v4  ;;  %v83_v10 = vsel %vm41_vm0, 1.0, %v145_v9  ;;  %v84_v11 = vsel %vm42_vm1, 1.0, %v145_v9  ;;  %v38_v12 = vmul.f32 %v36_v7, %v36_v7 }
   0xb   :  { %v56_v13 = vadd.f32 %v84_v11, %v83_v10 }
   0xc   :  { %v43_v14 = vsel %vm41_vm0, %v37_v8, 0.0  ;;  %v44_v15 = vsel %vm42_vm1, %v38_v12, 0.0 }
   0xd   :  { %v57_v16 = vrot.slane %v56_v13, 4  ;;  %v45_v17 = vadd.f32 %v44_v15, %v43_v14 }
   0xf   :  { %v58_v18 = vadd.f32 %v57_v16, %v56_v13  ;;  %v46_v19 = vrot.slane %v45_v17, 4 }
  0x11   :  { %v59_v20 = vrot.slane %v58_v18, 2  ;;  %v47_v21 = vadd.f32 %v46_v19, %v45_v17 }
  0x13   :  { %v60_v22 = vadd.f32 %v59_v20, %v58_v18  ;;  %v48_v23 = vrot.slane %v47_v21, 2 }
  0x15   :  { %v61_v24 = vrot.slane %v60_v22, 1  ;;  %v49_v25 = vadd.f32 %v48_v23, %v47_v21 }
  0x17   :  { %v50_v26 = vrot.slane %v49_v25, 1  ;;  %v62_v27 = vadd.f32 %v61_v24, %v60_v22 }
  0x19   :  { %v51_v28 = vadd.f32 %v50_v26, %v49_v25 }
  0x1b   :  { %v64_v29 = vsel %vm63_vm2, %v51_v28, %v62_v27 }
  0x1c   :  { %65 = vst [vmem:[#allocation5] sm:$0x3] %v64_v29 }
  0x1d   :  { %76 = dma.vmem_to_hbm [thread:$0]  %s72_s2, 32, %s74_s28, [#allocation4]  }
  0x1e   :  { %140 = dma.done.wait [#allocation4], 32  }
  0x1f   :  { %141 = vsyncadd [#allocation4], 4294967264 }
  0x20   :  { %81 = vsyncpa [#allocation3], 1 }
  0x21   :  { %82 = vsyncpa [#allocation4], 1 }

</bundles_post_ra>
